<compile_context>
chip_gen: v5e
topology: v5e:2x2
jax: 0.10.0
libtpu: 0.0.40
codegen_flags: <defaults>
</compile_context>

<pallas_src>
import jax
import jax.numpy as jnp
from jax.experimental import pallas as pl
from jax.experimental.pallas import tpu as pltpu


def _round_up(x, m):
    return (x + m - 1) // m * m


# ----------------------------------------------------------------------------
# Fused kernel: im2col conv (one matmul) + mask + max-pool + ReLU + fcl/tanh
# + both sigmoid heads.  The pooled feature vector never leaves VMEM.
# ----------------------------------------------------------------------------
def _mtm_fused_kernel(x_ref, wc_ref, mask_ref, bc_ref,
                      w1_ref, b1_ref, wh_ref, bh_ref, o_ref):
    # x_ref   : (Bt, Lp, Dp)   bf16  embedded tokens, zero-padded (Lp = Lc+h_max-1)
    # wc_ref  : (h_max*Dp, P)  bf16  im2col-flattened conv weights (pad rows/cols 0)
    # mask_ref: (Lc, P)        f32   additive position mask (0 valid / -1e30 invalid)
    # bc_ref  : (1, P)         f32   conv biases (0 in pad columns)
    # w1_ref  : (P, P)         bf16  fcl weight (rows >= F, cols >= A are zero)
    # b1_ref  : (1, P)         f32
    # wh_ref  : (P, P)         bf16  [api_w | cat_w | 0] packed head weights
    # bh_ref  : (1, P)         f32
    # o_ref   : (Bt, P)        f32   sigmoid([y | z | pad])
    Bt, Lp, Dp = x_ref.shape
    Lc, P = mask_ref.shape
    KD = wc_ref.shape[0]
    h_max = KD // Dp
    M = Bt * Lc

    x = x_ref[...]                                           # (Bt, Lp, Dp) bf16
    # im2col along the lane axis: xs[b, m, j*Dp:(j+1)*Dp] = x[b, m+j, :].
    # Each piece is a full 128-lane-aligned slab (Dp % 128 == 0) so the concat
    # is tile-aligned; sublane-offset slices of the zero-padded block never
    # cross document boundaries.  Invalid tail positions are killed by the
    # additive mask below.
    xs = jnp.concatenate([x[:, j:j + Lc, :] for j in range(h_max)], axis=-1)
    xs = xs.reshape(M, KD)                                   # no-op: Lc % 16 == 0

    # Every conv branch and tap in ONE MXU matmul (K = h_max*Dp, N = P = 128).
    acc = jnp.dot(xs, wc_ref[...], preferred_element_type=jnp.float32)   # (M, P)

    # Precomputed additive position mask, max-pool over positions, then bias +
    # ReLU (max commutes with the bias add and ReLU).
    acc = acc.reshape(Bt, Lc, P) + mask_ref[...][None]
    e = jnp.maximum(jnp.max(acc, axis=1) + bc_ref[...], 0.0)             # (Bt, P)

    # Fully-connected multi-task heads; `e` stays resident in VMEM.
    # TODO(synk): nn.Dropout omitted -- inference/eval semantics (identity).
    u = jnp.tanh(jnp.dot(e.astype(jnp.bfloat16), w1_ref[...],
                         preferred_element_type=jnp.float32) + b1_ref[...])
    o = jnp.dot(u.astype(jnp.bfloat16), wh_ref[...],
                preferred_element_type=jnp.float32) + bh_ref[...]
    o_ref[...] = jax.nn.sigmoid(o)


# ----------------------------------------------------------------------------
# One-time weight packing (outside the kernel; column order matches
# torch.cat(dim=2).view(B, -1): feature index = channel * n_branches + branch).
# ----------------------------------------------------------------------------
def pack_params(params, kernel_sizes, max_doc_len):
    conv_w, conv_b = params["conv_w"], params["conv_b"]
    nb = len(kernel_sizes)
    h_max = max(kernel_sizes)
    assert max_doc_len >= h_max, (
        "max_doc_len must be >= max(kernel_size); PyTorch Conv1d would also "
        "reject this configuration.")
    D = conv_w[0].shape[1]
    K = conv_w[0].shape[2]
    F = K * nb
    A = params["fcl_w"].shape[1]
    C = params["cat_w"].shape[1]
    P = _round_up(max(F, A, A + C), 128)   # lane-dense N for every matmul
    Dp = _round_up(D, 128)                 # lane-aligned channel width (zero pad)
    Lc = _round_up(max_doc_len, 16)        # bf16 sublane tile -> free reshapes
    KD = h_max * Dp

    # Conv weights flattened for the im2col matmul: row index = j*Dp + d.
    wc = jnp.zeros((KD, P), jnp.float32)
    bc = jnp.zeros((1, P), jnp.float32)
    valid = jnp.full((P,), max_doc_len, jnp.int32)   # pad cols: only L..Lc masked
    for bi, h in enumerate(kernel_sizes):
        cols = slice(bi, F, nb)                      # torch feature ordering
        w = jnp.pad(conv_w[bi], ((0, 0), (0, Dp - D), (0, 0)))   # (h, Dp, K)
        wc = wc.at[:h * Dp, cols].set(w.reshape(h * Dp, K))
        bc = bc.at[0, cols].set(conv_b[bi])
        valid = valid.at[cols].set(max_doc_len - h + 1)

    # Additive position mask: 0 where the conv window is valid, -1e30 otherwise.
    pos = jnp.arange(Lc, dtype=jnp.int32)[:, None]
    mask = jnp.where(pos < valid[None, :], 0.0, -1e30).astype(jnp.float32)

    w1 = jnp.zeros((P, P), jnp.float32).at[:F, :A].set(params["fcl_w"])
    b1 = jnp.zeros((1, P), jnp.float32).at[0, :A].set(params["fcl_b"])
    wh = jnp.zeros((P, P), jnp.float32)
    wh = wh.at[:A, :A].set(params["api_w"])
    wh = wh.at[:A, A:A + C].set(params["cat_w"])
    bh = jnp.zeros((1, P), jnp.float32)
    bh = bh.at[0, :A].set(params["api_b"])
    bh = bh.at[0, A:A + C].set(params["cat_b"])

    return dict(wc=wc.astype(jnp.bfloat16), mask=mask, bc=bc,
                w1=w1.astype(jnp.bfloat16), b1=b1,
                wh=wh.astype(jnp.bfloat16), bh=bh,
                A=A, C=C, P=P, Dp=Dp, Lc=Lc, h_max=h_max)


# ----------------------------------------------------------------------------
# VMEM footprint model (counts lane/sublane padding and the in-kernel f32
# intermediates) used to size the batch tile and vmem_limit_bytes.
# ----------------------------------------------------------------------------
def _kernel_vmem_bytes(bt, Lc, Lp, Dp, KD, P):
    m = bt * Lc
    x_blk = bt * _round_up(Lp, 16) * Dp * 2      # bf16 input block
    xs = m * KD * 2                              # im2col LHS (bf16)
    acc = 2 * m * P * 4                          # conv matmul out + masked copy (f32)
    out = bt * P * 4                             # output block (f32)
    return 2 * x_blk + xs + acc + 2 * out        # x & out are double-buffered


# ----------------------------------------------------------------------------
# Wrapper: batch-tiled fused call.
# ----------------------------------------------------------------------------
def mtm_fused_call(embed_bf16, packed):
    B, L, D = embed_bf16.shape
    P, Dp, Lc, h_max = packed["P"], packed["Dp"], packed["Lc"], packed["h_max"]
    KD = h_max * Dp
    Lp = Lc + h_max - 1                          # room for the h_max-1 halo rows

    # Weights / mask / biases have constant index maps -> DMA'd once.  At
    # P = 128 their footprint (~a few hundred KiB) is negligible, so we skip
    # pl.Buffered(1) single-buffering and keep the lowering simple.
    weight_bytes = (KD * P + 2 * P * P) * 2 + (Lc + 3) * P * 4

    # Largest power-of-two batch tile (multiple of 8) that keeps the per-step
    # footprint under a conservative 40 MiB (fits v7x's 64 MiB with headroom).
    budget = (40 << 20) - weight_bytes
    bt_cap = 8
    while bt_cap < 2048 and _kernel_vmem_bytes(2 * bt_cap, Lc, Lp, Dp, KD, P) <= budget:
        bt_cap *= 2
    # Keep >= 2 grid steps when B > 1 so the "parallel" axis feeds both v7x
    # TensorCores and the x DMA overlaps compute.
    want_steps = 2 if B > 1 else 1
    Bt = max(8, min(bt_cap, _round_up(pl.cdiv(B, want_steps), 8)))
    n_steps = max(want_steps, pl.cdiv(B, Bt))
    B_pad = n_steps * Bt

    # TODO(synk): for very long documents (Bt*Lc*P*4 approaching the budget),
    # stream the conv over L chunks (extra 'arbitrary' grid axis + running-max
    # scratch) instead of shrinking Bt further.
    embed_p = jnp.pad(embed_bf16,
                      ((0, B_pad - B), (0, Lp - L), (0, Dp - D)))

    flops = 2 * B_pad * Lc * KD * P + 2 * (2 * B_pad * P * P)
    bytes_accessed = (B_pad * Lp * Dp * 2       # x read
                      + B_pad * P * 4           # packed output write
                      + weight_bytes)           # weights / mask: DMA'd once
    cost = pl.CostEstimate(flops=flops, transcendentals=2 * B_pad * P,
                           bytes_accessed=bytes_accessed)

    vmem_limit = int(min(48 << 20,
                         max(32 << 20,
                             _kernel_vmem_bytes(Bt, Lc, Lp, Dp, KD, P)
                             + weight_bytes + (4 << 20))))

    out = pl.pallas_call(
        _mtm_fused_kernel,
        out_shape=jax.ShapeDtypeStruct((B_pad, P), jnp.float32),
        grid=(n_steps,),
        in_specs=[
            pl.BlockSpec((Bt, Lp, Dp), lambda i: (i, 0, 0)),   # x (batch tiled)
            pl.BlockSpec((KD, P), lambda i: (0, 0)),           # conv weights
            pl.BlockSpec((Lc, P), lambda i: (0, 0)),           # position mask
            pl.BlockSpec((1, P), lambda i: (0, 0)),            # conv bias
            pl.BlockSpec((P, P), lambda i: (0, 0)),            # fcl weight
            pl.BlockSpec((1, P), lambda i: (0, 0)),            # fcl bias
            pl.BlockSpec((P, P), lambda i: (0, 0)),            # packed head weights
            pl.BlockSpec((1, P), lambda i: (0, 0)),            # packed head bias
        ],
        out_specs=pl.BlockSpec((Bt, P), lambda i: (i, 0)),
        compiler_params=pltpu.CompilerParams(
            dimension_semantics=("parallel",),
            vmem_limit_bytes=vmem_limit),
        cost_estimate=cost,
    )(embed_p, packed["wc"], packed["mask"], packed["bc"],
      packed["w1"], packed["b1"], packed["wh"], packed["bh"])
    return out[:B]


def mtm_forward(tokens, params, kernel_sizes):
    packed = pack_params(params, kernel_sizes, tokens.shape[1])
    # TODO(synk): embedding gather stays as plain-JAX glue (XLA dynamic gather);
    # cast to bf16 so the kernel DMAs half the bytes & feeds the MXU natively.
    embed = params["embedding"][tokens].astype(jnp.bfloat16)
    out = mtm_fused_call(embed, packed)
    A, C = packed["A"], packed["C"]
    return out[:, :A], out[:, A:A + C]


# ----------------------------------------------------------------------------
# Pure-JAX f32 reference (PyTorch semantics) and deterministic init.
# ----------------------------------------------------------------------------
def mtm_forward_ref(tokens, params):
    embed = params["embedding"][tokens]
    outs = []
    for w, b in zip(params["conv_w"], params["conv_b"]):
        h = w.shape[0]
        L = embed.shape[1]
        S = L - h + 1
        acc = jnp.zeros((embed.shape[0], S, w.shape[2]), jnp.float32)
        for j in range(h):
            acc = acc + jnp.einsum("bld,dk->blk", embed[:, j:j + S, :], w[j])
        acc = jax.nn.relu(acc + b[None, None, :])
        outs.append(jnp.max(acc, axis=1))
    e = jnp.stack(outs, axis=2).reshape(tokens.shape[0], -1)
    u = jnp.tanh(e @ params["fcl_w"] + params["fcl_b"])
    y = jax.nn.sigmoid(u @ params["api_w"] + params["api_b"])
    z = jax.nn.sigmoid(u @ params["cat_w"] + params["cat_b"])
    return y, z


def init_params(key, vocab_size, embed_dim, num_kernel, kernel_sizes,
                num_api, num_category):
    ks = jax.random.split(key, 8)
    emb = 0.1 * jax.random.normal(ks[0], (vocab_size, embed_dim), jnp.float32)
    emb = emb.at[vocab_size - 1].set(0.0)   # padding_idx row is zero
    conv_w, conv_b = [], []
    for i, h in enumerate(kernel_sizes):
        kw, kb = jax.random.split(jax.random.fold_in(ks[1], i))
        conv_w.append(0.1 * jax.random.normal(kw, (h, embed_dim, num_kernel),
                                              jnp.float32))
        conv_b.append(0.1 * jax.random.normal(kb, (num_kernel,), jnp.float32))
    feat = num_kernel * len(kernel_sizes)
    return {
        "embedding": emb,
        "conv_w": conv_w,
        "conv_b": conv_b,
        "fcl_w": 0.1 * jax.random.normal(ks[2], (feat, num_api), jnp.float32),
        "fcl_b": 0.1 * jax.random.normal(ks[3], (num_api,), jnp.float32),
        "api_w": 0.1 * jax.random.normal(ks[4], (num_api, num_api), jnp.float32),
        "api_b": 0.1 * jax.random.normal(ks[5], (num_api,), jnp.float32),
        "cat_w": 0.1 * jax.random.normal(ks[6], (num_api, num_category), jnp.float32),
        "cat_b": 0.1 * jax.random.normal(ks[7], (num_category,), jnp.float32),
    }


if __name__ == "__main__":
    B, max_doc_len = 2, 16
    vocab_size, embed_dim = 50, 32
    num_kernel = 8
    kernel_sizes = (2, 3, 4)
    num_api, num_category = 16, 8

    key = jax.random.PRNGKey(0)
    k_tok, k_par = jax.random.split(key)
    mashup_des = jax.random.randint(k_tok, (B, max_doc_len), 0, vocab_size,
                                    dtype=jnp.int32)
    params = init_params(k_par, vocab_size, embed_dim, num_kernel,
                         kernel_sizes, num_api, num_category)

    y_m, z_m = mtm_forward(mashup_des, params, kernel_sizes)
    jax.block_until_ready((y_m, z_m))

    y_ref, z_ref = mtm_forward_ref(mashup_des, params)
    assert y_m.shape == (B, num_api) and z_m.shape == (B, num_category)
    # bf16 MXU operands (f32 accumulation) vs f32 reference -> relaxed tol.
    assert jnp.allclose(y_m, y_ref, atol=1e-2), "api head mismatch"
    assert jnp.allclose(z_m, z_ref, atol=1e-2), "category head mismatch"
    print("KERNEL_OK")
</pallas_src>

<mosaic_0001>
module attributes {stable_mosaic.version = 11 : i64} {
  func.func @_mtm_fused_kernel(%arg0: i32, %arg1: memref<8x19x128xbf16, #tpu.memory_space<vmem>>, %arg2: memref<512x128xbf16, #tpu.memory_space<vmem>>, %arg3: memref<16x128xf32, #tpu.memory_space<vmem>>, %arg4: memref<1x128xf32, #tpu.memory_space<vmem>>, %arg5: memref<128x128xbf16, #tpu.memory_space<vmem>>, %arg6: memref<1x128xf32, #tpu.memory_space<vmem>>, %arg7: memref<128x128xbf16, #tpu.memory_space<vmem>>, %arg8: memref<1x128xf32, #tpu.memory_space<vmem>>, %arg9: memref<8x128xf32, #tpu.memory_space<vmem>>) attributes {dimension_semantics = [#tpu.dimension_semantics<parallel>], iteration_bounds = array<i64: 2>, scalar_prefetch = 0 : i64, scratch_operands = 0 : i64, tpu.core_type = #tpu.core_type<tc>, window_params = [{transform_indices = @transform_0, window_bounds = array<i64: 8, 19, 128>}, {pipeline_mode = #tpu.pipeline_mode<synchronous>, transform_indices = @transform_1, window_bounds = array<i64: 512, 128>}, {pipeline_mode = #tpu.pipeline_mode<synchronous>, transform_indices = @transform_2, window_bounds = array<i64: 16, 128>}, {pipeline_mode = #tpu.pipeline_mode<synchronous>, transform_indices = @transform_3, window_bounds = array<i64: 1, 128>}, {pipeline_mode = #tpu.pipeline_mode<synchronous>, transform_indices = @transform_4, window_bounds = array<i64: 128, 128>}, {pipeline_mode = #tpu.pipeline_mode<synchronous>, transform_indices = @transform_5, window_bounds = array<i64: 1, 128>}, {pipeline_mode = #tpu.pipeline_mode<synchronous>, transform_indices = @transform_6, window_bounds = array<i64: 128, 128>}, {pipeline_mode = #tpu.pipeline_mode<synchronous>, transform_indices = @transform_7, window_bounds = array<i64: 1, 128>}, {transform_indices = @transform_8, window_bounds = array<i64: 8, 128>}]} {
    %c0 = arith.constant 0 : index
    %c0_0 = arith.constant 0 : index
    %c0_1 = arith.constant 0 : index
    %0 = vector.load %arg1[%c0, %c0_0, %c0_1] : memref<8x19x128xbf16, #tpu.memory_space<vmem>>, vector<8x19x128xbf16>
    %1 = vector.extract_strided_slice %0 {offsets = [0, 0, 0], sizes = [8, 16, 128], strides = [1, 1, 1]} : vector<8x19x128xbf16> to vector<8x16x128xbf16>
    %2 = vector.extract_strided_slice %0 {offsets = [0, 1, 0], sizes = [8, 16, 128], strides = [1, 1, 1]} : vector<8x19x128xbf16> to vector<8x16x128xbf16>
    %3 = vector.extract_strided_slice %0 {offsets = [0, 2, 0], sizes = [8, 16, 128], strides = [1, 1, 1]} : vector<8x19x128xbf16> to vector<8x16x128xbf16>
    %4 = vector.extract_strided_slice %0 {offsets = [0, 3, 0], sizes = [8, 16, 128], strides = [1, 1, 1]} : vector<8x19x128xbf16> to vector<8x16x128xbf16>
    %5 = tpu.concatenate %1, %2, %3, %4 in 2 : vector<8x16x128xbf16>, vector<8x16x128xbf16>, vector<8x16x128xbf16>, vector<8x16x128xbf16> -> vector<8x16x512xbf16>
    %6 = vector.shape_cast %5 : vector<8x16x512xbf16> to vector<128x512xbf16>
    %c0_2 = arith.constant 0 : index
    %c0_3 = arith.constant 0 : index
    %7 = vector.load %arg2[%c0_2, %c0_3] : memref<512x128xbf16, #tpu.memory_space<vmem>>, vector<512x128xbf16>
    %cst = arith.constant dense<0.000000e+00> : vector<128x128xf32>
    %8 = tpu.matmul %6, %7, %cst {dimension_numbers = #tpu.dot_dimension_numbers<[1], [0], [0], [1], [0, 0, 1, 1], [], []>} : vector<128x512xbf16>, vector<512x128xbf16>, vector<128x128xf32> -> vector<128x128xf32>
    %9 = vector.shape_cast %8 : vector<128x128xf32> to vector<8x16x128xf32>
    %c0_4 = arith.constant 0 : index
    %c0_5 = arith.constant 0 : index
    %10 = vector.load %arg3[%c0_4, %c0_5] : memref<16x128xf32, #tpu.memory_space<vmem>>, vector<16x128xf32>
    %11 = vector.shape_cast %10 : vector<16x128xf32> to vector<1x16x128xf32>
    %12 = vector.broadcast %11 : vector<1x16x128xf32> to vector<8x16x128xf32>
    %13 = arith.addf %9, %12 : vector<8x16x128xf32>
    %cst_6 = arith.constant dense<0xFF800000> : vector<8x128xf32>
    %14 = vector.multi_reduction <maximumf>, %13, %cst_6 [1] : vector<8x16x128xf32> to vector<8x128xf32>
    %c0_7 = arith.constant 0 : index
    %c0_8 = arith.constant 0 : index
    %15 = vector.load %arg4[%c0_7, %c0_8] : memref<1x128xf32, #tpu.memory_space<vmem>>, vector<1x128xf32>
    %16 = vector.broadcast %15 : vector<1x128xf32> to vector<8x128xf32>
    %17 = arith.addf %14, %16 : vector<8x128xf32>
    %cst_9 = arith.constant 0.000000e+00 : f32
    %18 = vector.broadcast %cst_9 : f32 to vector<8x128xf32>
    %19 = arith.maximumf %17, %18 : vector<8x128xf32>
    %20 = arith.truncf %19 : vector<8x128xf32> to vector<8x128xbf16>
    %c0_10 = arith.constant 0 : index
    %c0_11 = arith.constant 0 : index
    %21 = vector.load %arg5[%c0_10, %c0_11] : memref<128x128xbf16, #tpu.memory_space<vmem>>, vector<128x128xbf16>
    %cst_12 = arith.constant dense<0.000000e+00> : vector<8x128xf32>
    %22 = tpu.matmul %20, %21, %cst_12 {dimension_numbers = #tpu.dot_dimension_numbers<[1], [0], [0], [1], [0, 0, 1, 1], [], []>} : vector<8x128xbf16>, vector<128x128xbf16>, vector<8x128xf32> -> vector<8x128xf32>
    %c0_13 = arith.constant 0 : index
    %c0_14 = arith.constant 0 : index
    %23 = vector.load %arg6[%c0_13, %c0_14] : memref<1x128xf32, #tpu.memory_space<vmem>>, vector<1x128xf32>
    %24 = vector.broadcast %23 : vector<1x128xf32> to vector<8x128xf32>
    %25 = arith.addf %22, %24 : vector<8x128xf32>
    %26 = math.tanh %25 : vector<8x128xf32>
    %27 = arith.truncf %26 : vector<8x128xf32> to vector<8x128xbf16>
    %c0_15 = arith.constant 0 : index
    %c0_16 = arith.constant 0 : index
    %28 = vector.load %arg7[%c0_15, %c0_16] : memref<128x128xbf16, #tpu.memory_space<vmem>>, vector<128x128xbf16>
    %cst_17 = arith.constant dense<0.000000e+00> : vector<8x128xf32>
    %29 = tpu.matmul %27, %28, %cst_17 {dimension_numbers = #tpu.dot_dimension_numbers<[1], [0], [0], [1], [0, 0, 1, 1], [], []>} : vector<8x128xbf16>, vector<128x128xbf16>, vector<8x128xf32> -> vector<8x128xf32>
    %c0_18 = arith.constant 0 : index
    %c0_19 = arith.constant 0 : index
    %30 = vector.load %arg8[%c0_18, %c0_19] : memref<1x128xf32, #tpu.memory_space<vmem>>, vector<1x128xf32>
    %31 = vector.broadcast %30 : vector<1x128xf32> to vector<8x128xf32>
    %32 = arith.addf %29, %31 : vector<8x128xf32>
    %33 = arith.negf %32 : vector<8x128xf32>
    %34 = math.exp %33 : vector<8x128xf32>
    %cst_20 = arith.constant 1.000000e+00 : f32
    %35 = vector.broadcast %cst_20 : f32 to vector<8x128xf32>
    %36 = arith.addf %35, %34 : vector<8x128xf32>
    %37 = arith.divf %35, %36 : vector<8x128xf32>
    %c0_21 = arith.constant 0 : index
    %c0_22 = arith.constant 0 : index
    %38 = vector.load %arg9[%c0_21, %c0_22] : memref<8x128xf32, #tpu.memory_space<vmem>>, vector<8x128xf32>
    tpu.vector_store %arg9[%c0_21, %c0_22], %37 {strides = array<i32>} : memref<8x128xf32, #tpu.memory_space<vmem>>, vector<8x128xf32>,
    return
  }
  func.func @transform_0(%arg0: i32) -> (i32, i32, i32) {
    %c0_i32 = arith.constant 0 : i32
    %c0_i32_0 = arith.constant 0 : i32
    %c0_i32_1 = arith.constant 0 : i32
    return %arg0, %c0_i32, %c0_i32_0 : i32, i32, i32
  }
  func.func @transform_1(%arg0: i32) -> (i32, i32) {
    %c0_i32 = arith.constant 0 : i32
    %c0_i32_0 = arith.constant 0 : i32
    %c0_i32_1 = arith.constant 0 : i32
    return %c0_i32, %c0_i32_0 : i32, i32
  }
  func.func @transform_2(%arg0: i32) -> (i32, i32) {
    %c0_i32 = arith.constant 0 : i32
    %c0_i32_0 = arith.constant 0 : i32
    %c0_i32_1 = arith.constant 0 : i32
    return %c0_i32, %c0_i32_0 : i32, i32
  }
  func.func @transform_3(%arg0: i32) -> (i32, i32) {
    %c0_i32 = arith.constant 0 : i32
    %c0_i32_0 = arith.constant 0 : i32
    %c0_i32_1 = arith.constant 0 : i32
    return %c0_i32, %c0_i32_0 : i32, i32
  }
  func.func @transform_4(%arg0: i32) -> (i32, i32) {
    %c0_i32 = arith.constant 0 : i32
    %c0_i32_0 = arith.constant 0 : i32
    %c0_i32_1 = arith.constant 0 : i32
    return %c0_i32, %c0_i32_0 : i32, i32
  }
  func.func @transform_5(%arg0: i32) -> (i32, i32) {
    %c0_i32 = arith.constant 0 : i32
    %c0_i32_0 = arith.constant 0 : i32
    %c0_i32_1 = arith.constant 0 : i32
    return %c0_i32, %c0_i32_0 : i32, i32
  }
  func.func @transform_6(%arg0: i32) -> (i32, i32) {
    %c0_i32 = arith.constant 0 : i32
    %c0_i32_0 = arith.constant 0 : i32
    %c0_i32_1 = arith.constant 0 : i32
    return %c0_i32, %c0_i32_0 : i32, i32
  }
  func.func @transform_7(%arg0: i32) -> (i32, i32) {
    %c0_i32 = arith.constant 0 : i32
    %c0_i32_0 = arith.constant 0 : i32
    %c0_i32_1 = arith.constant 0 : i32
    return %c0_i32, %c0_i32_0 : i32, i32
  }
  func.func @transform_8(%arg0: i32) -> (i32, i32) {
    %c0_i32 = arith.constant 0 : i32
    %c0_i32_0 = arith.constant 0 : i32
    return %arg0, %c0_i32 : i32, i32
  }
}

</mosaic_0001>

<bundles_post_ra>
// kernel: tpu_custom_call.1
= control target key start
LH: loop header
LB: loop body
LE: loop exit
PB: predicated region body
PF: predicated region fallthrough
CT: control target
= control target key end

     0   :  { %13 = vsyncpa [#allocation3], 0  ;;  %s2315_s0 = inlined_call_operand.vmem [shape: bf16[16,19,128], index: 0, kind: input, shape index: {}]   ;;  %s2316_s1 = inlined_call_operand.vmem [shape: bf16[512,128], index: 1, kind: input, shape index: {}]   ;;  %s2317_s2 = inlined_call_operand.vmem [shape: f32[16,128], index: 2, kind: input, shape index: {}]   ;;  %s2318_s3 = inlined_call_operand.vmem [shape: f32[1,128], index: 3, kind: input, shape index: {}]   ;;  %s2319_s4 = inlined_call_operand.vmem [shape: bf16[128,128], index: 4, kind: input, shape index: {}]   ;;  %s2320_s5 = inlined_call_operand.vmem [shape: f32[1,128], index: 5, kind: input, shape index: {}]   ;;  %s2321_s6 = inlined_call_operand.hbm [shape: bf16[128,128], index: 6, kind: input, shape index: {}]   ;;  %s2322_s7 = inlined_call_operand.vmem [shape: f32[1,128], index: 7, kind: input, shape index: {}]   ;;  %s2323_s8 = inlined_call_operand.hbm [shape: f32[16,128], index: 8, kind: output, shape index: {}]  }
   0x1   :  { %14 = vsyncpa [#allocation4], 0 }
   0x2   :  { %16 = vsyncpa [#allocation4 + $0x1], 0  ;;  %s2007_s27 = smov 0   ;;  %s2009_s28 = smov 0  }
   0x3   :  { %s2011_s29 = smov 0   ;;  %s2013_s30 = smov 0  }
   0x4 LB: > { %s2028_s9 = sadd.s32 4294967295, %s1957_s30   ;;  %s1505_s10 = sadd.s32 4294967294, %s1957_s30   ;;  %s1957_s30 = sphi %s2013_s30, %s2329_s30   ;;  %s1953_s29 = sphi %s2011_s29, %s2328_s29   ;;  %s1949_s28 = sphi %s2009_s28, %s2327_s28   ;;  %s1945_s27 = sphi %s2007_s27, %s2326_s27  }
   0x5   : > { %s2032_s11 = sadd.s32 1, %s1957_s30   ;;  %s202_s12 = sadd.s32 1, %s1953_s29 }
   0x6   : > { %s199_s13 = ssub.s32 %s1957_s30, %s2032_s11  ;;  %p212_p0 = scmp.ne.s32.totalorder %s1953_s29, %s1949_s28 }
   0x7   : > { %p200_p1 = scmp.eq.s32.totalorder %s199_s13, 0  ;;  %p213_p2 = scmp.eq.s32.totalorder %s2028_s9, 1 }
   0x8   : > { %p218_p3 = scmp.ne.s32.totalorder %s1949_s28, %s1945_s27  ;;  %p219_p4 = scmp.eq.s32.totalorder %s1505_s10, 1 }
   0x9   : > { %s2043_s14 = scalar_select %p200_p1, %s1953_s29, %s202_s12  }
   0xa   : > { %p2045_p5 = por %p213_p2, %p212_p0  ;;  %p2049_p6 = por %p219_p4, %p218_p3 }
   0xb   : > { %p1506_p7 = scmp.ge.s32.totalorder %s1957_s30, 1  ;;  %p226_p8 = scmp.lt.s32.totalorder %s1957_s30, 3 }
   0xc   : > { %p1814_p9 = scmp.eq.s32.totalorder %s2028_s9, 0  ;;  %s252_s19 = sshll.u32 %s2321_s6, 4  ;;  %s253_s19 = int_to_ptr.hbm [resolvable:$true] %s252_s19 }
   0xd   : > { %p227_p10 = pnand %p1506_p7, %p226_p8  ;;  %s1959_s20 = smov [#allocation2]  }
   0xe   : > { %s254_s21 = sshll.u32 %s1959_s20, 4  ;;  %s1960_s22 = smov 64   ;;  %s255_s21 = int_to_ptr.vmem [resolvable:$true] %s254_s21 }
   0xf   : > { %p1806_p11 = pneg %p227_p10  ;;  %s1961_s23 = smov 4  }
  0x10   : > { %283 = sbr.rel (%p227_p10) target bundleno = 637 (0x27d), region = 52 }
  0x11   : > { %p1807_p12 = pnand %p1814_p9, %p1806_p11 }
  0x13   : > { %1809 = dma.hbm_to_vmem [thread:$0]  (!%p1807_p12), %s253_s19, 1024, %s255_s21, [#allocation3], %s1960_s22, %s1960_s22, %s1961_s23  }
  0x15   : > { %1936 = dma.done.wait (%p1814_p9), [#allocation3], 1024  }
  0x16   : > { %1938 = vsyncadd (%p1814_p9), [#allocation3], 4294966272  ;;  %s2066_s24 = sshll.u32 %s2028_s9, 3  ;;  %v1758_v0 = vld [vmem:[%s2316_s1 + $0x38] sm:$0xff]  ;;  %v1757_v4 = vld [vmem:[%s2316_s1 + $0x30] sm:$0xff]  ;;  %vm527_vm1 = vcmask 1046528  }
  0x17   : > { %p320_p13 = scmp.lt.s32.totalorder %s2066_s24, 15  ;;  %v1766_v1 = vld [vmem:[%s2316_s1 + $0x78] sm:$0xff]  ;;  %897 = vmatpush.bf16.msra.mxu0 %v1758_v0  ;;  %v1765_v5 = vld [vmem:[%s2316_s1 + $0x70] sm:$0xff]  ;;  %v1756_v8 = vld [vmem:[%s2316_s1 + $0x28] sm:$0xff]  ;;  %vm422_vm0 = vsmask.f32 7424  ;;  %s1429_s22 = scalar_lea.hbm %s2323_s8, %s2066_s24 }
  0x18   : > { %v1774_v2 = vld [vmem:[%s2316_s1 + $0xb8] sm:$0xff]  ;;  %946 = vmatpush.bf16.msra.mxu1 %v1766_v1  ;;  %v1773_v6 = vld [vmem:[%s2316_s1 + $0xb0] sm:$0xff]  ;;  %v1764_v9 = vld [vmem:[%s2316_s1 + $0x68] sm:$0xff]  ;;  %vm560_vm2 = vsmask.f32 6400  ;;  %vm1232_vm3 = vcmask 1041409  }
  0x19   : > { %s321_s18 = scalar_select %p320_p13, %s2066_s24, 15  ;;  %v1782_v3 = vld [vmem:[%s2316_s1 + $0xf8] sm:$0xff]  ;;  %995 = vmatpush.bf16.msra.mxu2 %v1774_v2  ;;  %v1781_v7 = vld [vmem:[%s2316_s1 + $0xf0] sm:$0xff]  ;;  %v1772_v10 = vld [vmem:[%s2316_s1 + $0xa8] sm:$0xff]  ;;  %vm1235_vm4 = vcmask 1042434   ;;  %vm1238_vm5 = vcmask 1043459  }
  0x1a   : > { %1044 = vmatpush.bf16.msra.mxu3 %v1782_v3  ;;  %v1780_v11 = vld [vmem:[%s2316_s1 + $0xe8] sm:$0xff]  ;;  %v1755_v12 = vld [vmem:[%s2316_s1 + $0x20] sm:$0xff]  ;;  %v1754_v18 = vld [vmem:[%s2316_s1 + $0x18] sm:$0xff]  ;;  %vm1241_vm6 = vcmask 1044484   ;;  %vm1244_vm7 = vcmask 1045509   ;;  %vm1247_vm8 = vcmask 1046534  }
  0x1b   : > { %s1799_s13 = smul.u32 12, %s321_s18  ;;  %898 = vmatpush.bf16.msra.mxu0 %v1757_v4  ;;  %v1763_v13 = vld [vmem:[%s2316_s1 + $0x60] sm:$0xff]  ;;  %v1762_v19 = vld [vmem:[%s2316_s1 + $0x58] sm:$0xff]  ;;  %v1753_v24 = vld [vmem:[%s2316_s1 + $0x10] sm:$0xff]  ;;  %vm1250_vm9 = vcmask 1047559   ;;  %s1433_s18 = sshll.u32 %s1429_s22, 4  ;;  %s1434_s18 = int_to_ptr.hbm [resolvable:$true] %s1433_s18 }
  0x1c   : > { %947 = vmatpush.bf16.msra.mxu1 %v1765_v5  ;;  %v1771_v14 = vld [vmem:[%s2316_s1 + $0xa0] sm:$0xff]  ;;  %v1770_v21 = vld [vmem:[%s2316_s1 + $0x98] sm:$0xff]  ;;  %v1761_v25 = vld [vmem:[%s2316_s1 + $0x50] sm:$0xff]  ;;  %s1905_s24 = sshra.s32 %s1434_s18, 4  ;;  %s1911_s20 = scalar_lea.hbm %s2323_s8, 16  ;;  %s1906_s24 = int_to_ptr.hbm [resolvable:$true] %s1905_s24 }
  0x1d   : > { %996 = vmatpush.bf16.msra.mxu2 %v1773_v6  ;;  %s2109_s10 = scalar_lea.vmem %s2315_s0, %s1799_s13  ;;  %v1779_v15 = vld [vmem:[%s2316_s1 + $0xe0] sm:$0xff]  ;;  %v1778_v22 = vld [vmem:[%s2316_s1 + $0xd8] sm:$0xff]  ;;  %v1769_v27 = vld [vmem:[%s2316_s1 + $0x90] sm:$0xff]  ;;  %s1907_s12 = scalar_lea.hbm %s1906_s24, 8 }
  0x1e   : > { %1045 = vmatpush.bf16.msra.mxu3 %v1781_v7  ;;  %v328_v16 = vld [vmem:[%s2109_s10 + $0x8] sm:$0x3]  ;;  %v1743_v20 = vld [vmem:[%s2109_s10] sm:$0xff]  ;;  %v1777_v28 = vld [vmem:[%s2316_s1 + $0xd0] sm:$0xff]  ;;  %p1908_p0 = scmp.ne.s32.totalorder %s1906_s24, %s1907_s12  ;;  %p1912_p3 = scmp.lt.s32.totalorder %s1906_s24, %s2323_s8 }
  0x1f   : > { %899 = vmatpush.bf16.msra.mxu0 %v1756_v8  ;;  %v406_v17 = vunpack.c.l.b16 %v328_v16  ;;  %v426_v26 = vshll.u32 %v1743_v20, 16  ;;  %v424_v29 = vshrl.u32 %v1743_v20, 16  ;;  %v1752_v32 = vld [vmem:[%s2316_s1 + $0x8] sm:$0xff]  ;;  %v331_v41 = vld [vmem:[%s2109_s10 + $0x14] sm:$0x3]  ;;  %v1751_v42 = vld [vmem:[%s2316_s1] sm:$0xff]  ;;  %p1913_p4 = scmp.lt.s32.totalorder %s1911_s20, %s1907_s12 }
  0x20   : > { %948 = vmatpush.bf16.msra.mxu1 %v1764_v9  ;;  %v1760_v33 = vld [vmem:[%s2316_s1 + $0x48] sm:$0xff]  ;;  %v1759_v43 = vld [vmem:[%s2316_s1 + $0x40] sm:$0xff]  ;;  %v528_v46 = vrot.slane %v1743_v20, 1  ;;  %v407_v52 = vunpack.c.l.b16 %v331_v41  ;;  %p1909_p1 = pnand %p1908_p0, %p2045_p5 }
  0x21   : > { %997 = vmatpush.bf16.msra.mxu2 %v1772_v10  ;;  %v414_v23 = vpack.c.b16 %v406_v17, %v406_v17  ;;  %v428_v34 = vrot.slane %v426_v26, 1  ;;  %v1768_v35 = vld [vmem:[%s2316_s1 + $0x88] sm:$0xff]  ;;  %v561_v37 = vrot.slane %v424_v29, 1  ;;  %v562_v38 = vrot.slane %v426_v26, 2  ;;  %v1767_v47 = vld [vmem:[%s2316_s1 + $0x80] sm:$0xff]  ;;  %p1914_p7 = por %p1913_p4, %p1912_p3 }
  0x22   : > { %1046 = vmatpush.bf16.msra.mxu3 %v1780_v11  ;;  %v1776_v36 = vld [vmem:[%s2316_s1 + $0xc8] sm:$0xff]  ;;  %v1775_v48 = vld [vmem:[%s2316_s1 + $0xc0] sm:$0xff]  ;;  %v415_v57 = vpack.c.b16 %v407_v52, %v407_v52  ;;  %p1910_p2 = pneg %p1909_p1 }
  0x23   : > { %900 = vmatpush.bf16.msra.mxu0 %v1755_v12  ;;  %v431_v30 = vshll.u32 %v414_v23, 16  ;;  %v564_v31 = vshrl.u32 %v414_v23, 16  ;;  %v429_v44 = vor.u32 %v428_v34, %v424_v29  ;;  %v529_v49 = vrot.slane %v414_v23, 1  ;;  %v1744_v54 = vld [vmem:[%s2109_s10 + $0xc] sm:$0xff]  ;;  %v334_v3 = vld [vmem:[%s2109_s10 + $0x20] sm:$0x3] }
  0x24   : > { %949 = vmatpush.bf16.msra.mxu1 %v1763_v13  ;;  %v563_v50 = vor.u32 %v562_v38, %v561_v37  ;;  %v438_v58 = vshll.u32 %v1744_v54, 16  ;;  %v436_v59 = vshrl.u32 %v1744_v54, 16  ;;  %v443_v60 = vshll.u32 %v415_v57, 16  ;;  %v1745_v12 = vld [vmem:[%s2109_s10 + $0x18] sm:$0xff]  ;;  %v1746_v34 = vld [vmem:[%s2109_s10 + $0x24] sm:$0xff]  ;;  %p1915_p8 = pnand %p1914_p7, %p1910_p2 }
  0x25   : > { %998 = vmatpush.bf16.msra.mxu2 %v1771_v14  ;;  %v566_v39 = vrot.slane %v564_v31, 1  ;;  %v567_v40 = vrot.slane %v431_v30, 2  ;;  %v433_v45 = vrot.slane %v431_v30, 1  ;;  %v530_v55 = vsel %vm527_vm1, %v528_v46, %v529_v49 }
  0x26   : > { %1047 = vmatpush.bf16.msra.mxu3 %v1779_v15  ;;  %v573_v61 = vshrl.u32 %v415_v57, 16  ;;  %v440_v62 = vrot.slane %v438_v58, 1  ;;  %v570_v63 = vrot.slane %v436_v59, 1  ;;  %v571_v0 = vrot.slane %v438_v58, 2 }
  0x27   : > { %901 = vmatpush.bf16.msra.mxu0 %v1754_v18  ;;  %v568_v51 = vor.u32 %v567_v40, %v566_v39  ;;  %v434_v53 = vsel %vm422_vm0, %v429_v44, %v433_v45  ;;  %v576_v2 = vrot.slane %v443_v60, 2  ;;  %v445_v5 = vrot.slane %v443_v60, 1 }
  0x28   : > { %950 = vmatpush.bf16.msra.mxu1 %v1762_v19  ;;  %v575_v1 = vrot.slane %v573_v61, 1  ;;  %v441_v4 = vor.u32 %v440_v62, %v436_v59  ;;  %v531_v6 = vrot.slane %v1744_v54, 1  ;;  %v532_v7 = vrot.slane %v415_v57, 1 }
  0x29   : > { %999 = vmatpush.bf16.msra.mxu2 %v1770_v21  ;;  %v569_v56 = vsel %vm560_vm2, %v563_v50, %v568_v51  ;;  %v572_v8 = vor.u32 %v571_v0, %v570_v63  ;;  %v408_v10 = vunpack.c.l.b16 %v334_v3  ;;  %v450_v16 = vshll.u32 %v1745_v12, 16 }
  0x2a   : > { %1048 = vmatpush.bf16.msra.mxu3 %v1778_v22  ;;  %v577_v9 = vor.u32 %v576_v2, %v575_v1  ;;  %v446_v11 = vsel %vm422_vm0, %v441_v4, %v445_v5  ;;  %v533_v13 = vsel %vm527_vm1, %v531_v6, %v532_v7  ;;  %v448_v17 = vshrl.u32 %v1745_v12, 16  ;;  %v343_v5 = vld [vmem:[%s2109_s10 + $0x44] sm:$0x3] }
  0x2b   : > { %902 = vmatpush.bf16.msra.mxu0 %v1753_v24  ;;  %v416_v15 = vpack.c.b16 %v408_v10, %v408_v10  ;;  %v580_v22 = vrot.slane %v450_v16, 2  ;;  %v462_v38 = vshll.u32 %v1746_v34, 16  ;;  %v460_v39 = vshrl.u32 %v1746_v34, 16 }
  0x2c   : > { %951 = vmatpush.bf16.msra.mxu1 %v1761_v25  ;;  %v578_v14 = vsel %vm560_vm2, %v572_v8, %v577_v9  ;;  %v579_v21 = vrot.slane %v448_v17, 1  ;;  %v337_v25 = vld [vmem:[%s2109_s10 + $0x2c] sm:$0x3]  ;;  %v537_v50 = vrot.slane %v1746_v34, 1 }
  0x2d   : > { %1000 = vmatpush.bf16.msra.mxu2 %v1769_v27  ;;  %v455_v18 = vshll.u32 %v416_v15, 16  ;;  %v582_v19 = vshrl.u32 %v416_v15, 16  ;;  %v535_v29 = vrot.slane %v416_v15, 1  ;;  %v589_v44 = vrot.slane %v462_v38, 2 }
  0x2e   : > { %1049 = vmatpush.bf16.msra.mxu3 %v1777_v28  ;;  %v534_v28 = vrot.slane %v1745_v12, 1  ;;  %v581_v30 = vor.u32 %v580_v22, %v579_v21 }
  0x2f   : > { %903 = vmatpush.bf16.msra.mxu0 %v1752_v32  ;;  %v584_v23 = vrot.slane %v582_v19, 1  ;;  %v585_v24 = vrot.slane %v455_v18, 2  ;;  %v457_v27 = vrot.slane %v455_v18, 1  ;;  %v409_v32 = vunpack.c.l.b16 %v337_v25 }
  0x30   : > { %952 = vmatpush.bf16.msra.mxu1 %v1760_v33 }
  0x31   : > { %1001 = vmatpush.bf16.msra.mxu2 %v1768_v35  ;;  %v586_v31 = vor.u32 %v585_v24, %v584_v23  ;;  %v536_v35 = vsel %vm527_vm1, %v534_v28, %v535_v29  ;;  %v417_v37 = vpack.c.b16 %v409_v32, %v409_v32 }
  0x32   : > { %1050 = vmatpush.bf16.msra.mxu3 %v1776_v36 }
  0x33   : > { %904 = vmatpush.bf16.msra.mxu0 %v1751_v42  ;;  %v587_v36 = vsel %vm560_vm2, %v581_v30, %v586_v31  ;;  %v467_v40 = vshll.u32 %v417_v37, 16  ;;  %v591_v41 = vshrl.u32 %v417_v37, 16  ;;  %v464_v42 = vrot.slane %v462_v38, 1 }
  0x34   : > { %953 = vmatpush.bf16.msra.mxu1 %v1759_v43  ;;  %v588_v43 = vrot.slane %v460_v39, 1  ;;  %v538_v51 = vrot.slane %v417_v37, 1 }
  0x35   : > { %1002 = vmatpush.bf16.msra.mxu2 %v1767_v47  ;;  %v593_v45 = vrot.slane %v591_v41, 1  ;;  %v594_v46 = vrot.slane %v467_v40, 2  ;;  %v340_v47 = vld [vmem:[%s2109_s10 + $0x38] sm:$0x3]  ;;  %v469_v49 = vrot.slane %v467_v40, 1 }
  0x36   : > { %1051 = vmatpush.bf16.msra.mxu3 %v1775_v48  ;;  %905 = vmatmul.bf16.vlgmr.msra.gmra.mxu0 %v1743_v20  ;;  %v452_v20 = vrot.slane %v450_v16, 1  ;;  %v465_v48 = vor.u32 %v464_v42, %v460_v39  ;;  %v590_v52 = vor.u32 %v589_v44, %v588_v43  ;;  %v539_v57 = vsel %vm527_vm1, %v537_v50, %v538_v51 }
  0x37   : > { %954 = vmatmul.bf16.vlgmr.msra.gmra.mxu1 %v434_v53  ;;  %v595_v53 = vor.u32 %v594_v46, %v593_v45 }
  0x38   : > { %1003 = vmatmul.bf16.vlgmr.msra.gmra.mxu2 %v530_v55  ;;  %v453_v26 = vor.u32 %v452_v20, %v448_v17  ;;  %v470_v55 = vsel %vm422_vm0, %v465_v48, %v469_v49  ;;  %v349_v49 = vld [vmem:[%s2109_s10 + $0x5c] sm:$0x3] }
  0x39   : > { %1052 = vmatmul.bf16.vlgmr.msra.gmra.mxu3 %v569_v56  ;;  %v1747_v56 = vld [vmem:[%s2109_s10 + $0x30] sm:$0xff]  ;;  %v596_v58 = vsel %vm560_vm2, %v590_v52, %v595_v53 }
  0x3a   : > { %v458_v33 = vsel %vm422_vm0, %v453_v26, %v457_v27  ;;  %v474_v60 = vshll.u32 %v1747_v56, 16  ;;  %v472_v61 = vshrl.u32 %v1747_v56, 16  ;;  %v540_v8 = vrot.slane %v1747_v56, 1  ;;  %v346_v27 = vld [vmem:[%s2109_s10 + $0x50] sm:$0x3] }
  0x3c   : > { %v476_v0 = vrot.slane %v474_v60, 1  ;;  %v597_v1 = vrot.slane %v472_v61, 1  ;;  %v598_v2 = vrot.slane %v474_v60, 2 }
  0x3e   : > { %v477_v6 = vor.u32 %v476_v0, %v472_v61  ;;  %v599_v10 = vor.u32 %v598_v2, %v597_v1 }
  0x46   : > { %910 = vmatmul.bf16.gmra.mxu0 %v1744_v54  ;;  %v410_v54 = vunpack.c.l.b16 %v340_v47 }
  0x47   : > { %959 = vmatmul.bf16.gmra.mxu1 %v446_v11 }
  0x48   : > { %1008 = vmatmul.bf16.gmra.mxu2 %v533_v13  ;;  %v418_v59 = vpack.c.b16 %v410_v54, %v410_v54 }
  0x49   : > { %1057 = vmatmul.bf16.gmra.mxu3 %v578_v14  ;;  %v1748_v14 = vld [vmem:[%s2109_s10 + $0x3c] sm:$0xff] }
  0x4a   : > { %v479_v62 = vshll.u32 %v418_v59, 16  ;;  %v600_v63 = vshrl.u32 %v418_v59, 16  ;;  %v541_v9 = vrot.slane %v418_v59, 1  ;;  %v486_v18 = vshll.u32 %v1748_v14, 16 }
  0x4b   : > { %v484_v19 = vshrl.u32 %v1748_v14, 16  ;;  %v543_v30 = vrot.slane %v1748_v14, 1 }
  0x4c   : > { %v602_v3 = vrot.slane %v600_v63, 1  ;;  %v603_v4 = vrot.slane %v479_v62, 2  ;;  %v481_v7 = vrot.slane %v479_v62, 1  ;;  %v542_v15 = vsel %vm527_vm1, %v540_v8, %v541_v9 }
  0x4d   : > { %v488_v22 = vrot.slane %v486_v18, 1  ;;  %v606_v23 = vrot.slane %v484_v19, 1  ;;  %v607_v24 = vrot.slane %v486_v18, 2 }
  0x4e   : > { %v604_v11 = vor.u32 %v603_v4, %v602_v3  ;;  %v482_v13 = vsel %vm422_vm0, %v477_v6, %v481_v7 }
  0x4f   : > { %v489_v28 = vor.u32 %v488_v22, %v484_v19  ;;  %v608_v32 = vor.u32 %v607_v24, %v606_v23 }
  0x50   : > { %v605_v16 = vsel %vm560_vm2, %v599_v10, %v604_v11 }
  0x56   : > { %915 = vmatmul.bf16.gmra.mxu0 %v1745_v12  ;;  %v411_v12 = vunpack.c.l.b16 %v343_v5 }
  0x57   : > { %964 = vmatmul.bf16.gmra.mxu1 %v458_v33 }
  0x58   : > { %1013 = vmatmul.bf16.gmra.mxu2 %v536_v35  ;;  %v419_v17 = vpack.c.b16 %v411_v12, %v411_v12 }
  0x59   : > { %1062 = vmatmul.bf16.gmra.mxu3 %v587_v36  ;;  %v1749_v36 = vld [vmem:[%s2109_s10 + $0x48] sm:$0xff] }
  0x5a   : > { %v491_v20 = vshll.u32 %v419_v17, 16  ;;  %v609_v21 = vshrl.u32 %v419_v17, 16  ;;  %v544_v31 = vrot.slane %v419_v17, 1  ;;  %v498_v40 = vshll.u32 %v1749_v36, 16 }
  0x5b   : > { %v496_v41 = vshrl.u32 %v1749_v36, 16  ;;  %v546_v52 = vrot.slane %v1749_v36, 1 }
  0x5c   : > { %v611_v25 = vrot.slane %v609_v21, 1  ;;  %v612_v26 = vrot.slane %v491_v20, 2  ;;  %v493_v29 = vrot.slane %v491_v20, 1  ;;  %v545_v37 = vsel %vm527_vm1, %v543_v30, %v544_v31  ;;  %v2214_v31 = vld [vmem:[%s2317_s2] sm:$0xff] }
  0x5d   : > { %v500_v44 = vrot.slane %v498_v40, 1  ;;  %v615_v45 = vrot.slane %v496_v41, 1  ;;  %v616_v46 = vrot.slane %v498_v40, 2 }
  0x5e   : > { %v613_v33 = vor.u32 %v612_v26, %v611_v25  ;;  %v494_v35 = vsel %vm422_vm0, %v489_v28, %v493_v29 }
  0x5f   : > { %v501_v50 = vor.u32 %v500_v44, %v496_v41  ;;  %v617_v54 = vor.u32 %v616_v46, %v615_v45 }
  0x60   : > { %v614_v38 = vsel %vm560_vm2, %v608_v32, %v613_v33  ;;  %v2219_v32 = vld [vmem:[%s2317_s2 + $0x8] sm:$0xff] }
  0x66   : > { %920 = vmatmul.bf16.gmra.mxu0 %v1746_v34  ;;  %v412_v34 = vunpack.c.l.b16 %v346_v27 }
  0x67   : > { %969 = vmatmul.bf16.gmra.mxu1 %v470_v55 }
  0x68   : > { %1018 = vmatmul.bf16.gmra.mxu2 %v539_v57  ;;  %v420_v39 = vpack.c.b16 %v412_v34, %v412_v34 }
  0x69   : > { %1067 = vmatmul.bf16.gmra.mxu3 %v596_v58  ;;  %v1750_v58 = vld [vmem:[%s2109_s10 + $0x54] sm:$0xff]  ;;  %s316_s10 = sand.u32 1, %s1949_s28  }
  0x6a   : > { %v503_v42 = vshll.u32 %v420_v39, 16  ;;  %v618_v43 = vshrl.u32 %v420_v39, 16  ;;  %v547_v53 = vrot.slane %v420_v39, 1  ;;  %v510_v62 = vshll.u32 %v1750_v58, 16  ;;  %s1511_s9 = sshll.u32 %s316_s10, 3  ;;  %s1419_s26 = scalar_lea.sflag [#allocation4], %s316_s10 }
  0x6b   : > { %v508_v63 = vshrl.u32 %v1750_v58, 16  ;;  %v549_v9 = vrot.slane %v1750_v58, 1  ;;  %s318_s23 = scalar_lea.vmem [#allocation5], %s1511_s9 }
  0x6c   : > { %v620_v47 = vrot.slane %v618_v43, 1  ;;  %v621_v48 = vrot.slane %v503_v42, 2  ;;  %v505_v51 = vrot.slane %v503_v42, 1  ;;  %v548_v59 = vsel %vm527_vm1, %v546_v52, %v547_v53  ;;  %s1431_s25 = sshll.u32 %s318_s23, 4  ;;  %s1432_s25 = int_to_ptr.vmem [resolvable:$true] %s1431_s25 }
  0x6d   : > { %v512_v2 = vrot.slane %v510_v62, 1  ;;  %v624_v3 = vrot.slane %v508_v63, 1  ;;  %v625_v4 = vrot.slane %v510_v62, 2 }
  0x6e   : > { %v622_v55 = vor.u32 %v621_v48, %v620_v47  ;;  %v506_v57 = vsel %vm422_vm0, %v501_v50, %v505_v51  ;;  %v1790_v47 = vld [vmem:[%s2319_s4 + $0x38] sm:$0xff] }
  0x6f   : > { %v513_v7 = vor.u32 %v512_v2, %v508_v63  ;;  %v626_v11 = vor.u32 %v625_v4, %v624_v3  ;;  %1302 = vmatpush.bf16.msrb.mxu0 %v1790_v47 }
  0x70   : > { %v623_v60 = vsel %vm560_vm2, %v617_v54, %v622_v55 }
  0x76   : > { %925 = vmatmul.bf16.gmra.mxu0 %v1747_v56  ;;  %v413_v56 = vunpack.c.l.b16 %v349_v49 }
  0x77   : > { %974 = vmatmul.bf16.gmra.mxu1 %v482_v13 }
  0x78   : > { %1023 = vmatmul.bf16.gmra.mxu2 %v542_v15  ;;  %v421_v61 = vpack.c.b16 %v413_v56, %v413_v56 }
  0x79   : > { %1072 = vmatmul.bf16.gmra.mxu3 %v605_v16 }
  0x7a   : > { %v515_v0 = vshll.u32 %v421_v61, 16  ;;  %v627_v1 = vshrl.u32 %v421_v61, 16  ;;  %v550_v10 = vrot.slane %v421_v61, 1 }
  0x7c   : > { %v629_v5 = vrot.slane %v627_v1, 1  ;;  %v630_v6 = vrot.slane %v515_v0, 2  ;;  %v517_v8 = vrot.slane %v515_v0, 1 }
  0x7e   : > { %v631_v12 = vor.u32 %v630_v6, %v629_v5  ;;  %v518_v13 = vsel %vm422_vm0, %v513_v7, %v517_v8  ;;  %v2231_v7 = vld [vmem:[%s2318_s3] ss:$0 sm:$0xff] }
  0x80   : > { %v632_v15 = vsel %vm560_vm2, %v626_v11, %v631_v12 }
  0x86   : > { %930 = vmatmul.bf16.gmra.mxu0 %v1748_v14  ;;  %v551_v14 = vsel %vm527_vm1, %v549_v9, %v550_v10  ;;  %v1789_v9 = vld [vmem:[%s2319_s4 + $0x30] sm:$0xff] }
  0x87   : > { %979 = vmatmul.bf16.gmra.mxu1 %v494_v35  ;;  %1303 = vmatpush.bf16.msrb.mxu0 %v1789_v9 }
  0x88   : > { %1028 = vmatmul.bf16.gmra.mxu2 %v545_v37 }
  0x89   : > { %1077 = vmatmul.bf16.gmra.mxu3 %v614_v38 }
  0x96   : > { %935 = vmatmul.bf16.gmra.mxu0 %v1749_v36 }
  0x97   : > { %984 = vmatmul.bf16.gmra.mxu1 %v506_v57 }
  0x98   : > { %1033 = vmatmul.bf16.gmra.mxu2 %v548_v59 }
  0x99   : > { %1082 = vmatmul.bf16.gmra.mxu3 %v623_v60 }
  0xa6   : > { %940 = vmatmul.bf16.gmra.mxu0 %v1750_v58 }
  0xa7   : > { %989 = vmatmul.bf16.gmra.mxu1 %v518_v13 }
  0xa8   : > { %1038 = vmatmul.bf16.gmra.mxu2 %v551_v14 }
  0xa9   : > { %1087 = vmatmul.bf16.gmra.mxu3 %v632_v15 }
  0xb3   : > { %v906_v16 = vpop.f32.mrf.mxu0 }
  0xb4   : > { %v955_v17 = vpop.f32.mrf.mxu1 }
  0xb5   : > { %v956_v18 = vadd.f32 %v955_v17, %v906_v16 }
  0xbb   : > { %v1004_v19 = vpop.f32.mrf.mxu2  ;;  %v908_v22 = vpop.f32.mrf.mxu0 }
  0xbc   : > { %v1053_v20 = vpop.f32.mrf.mxu3  ;;  %v1005_v21 = vadd.f32 %v1004_v19, %v956_v18  ;;  %v957_v23 = vpop.f32.mrf.mxu1 }
  0xbd   : > { %v958_v24 = vadd.f32 %v957_v23, %v908_v22 }
  0xbe   : > { %v1054_v25 = vadd.f32 %v1053_v20, %v1005_v21 }
  0xc0   : > { %v1095_v35 = vadd.f32 %v2214_v31, %v1054_v25 }
  0xc3   : > { %v1006_v26 = vpop.f32.mrf.mxu2  ;;  %v911_v29 = vpop.f32.mrf.mxu0 }
  0xc4   : > { %v1055_v27 = vpop.f32.mrf.mxu3  ;;  %v1007_v28 = vadd.f32 %v1006_v26, %v958_v24  ;;  %v960_v30 = vpop.f32.mrf.mxu1 }
  0xc5   : > { %v961_v33 = vadd.f32 %v960_v30, %v911_v29 }
  0xc6   : > { %v1056_v34 = vadd.f32 %v1055_v27, %v1007_v28 }
  0xc8   : > { %v1096_v36 = vadd.f32 %v2219_v32, %v1056_v34 }
  0xca   : > { %v1111_v37 = vmax.f32 %v1095_v35, %v1096_v36 }
  0xcb   : > { %v1009_v38 = vpop.f32.mrf.mxu2  ;;  %v913_v42 = vpop.f32.mrf.mxu0 }
  0xcc   : > { %v1058_v39 = vpop.f32.mrf.mxu3  ;;  %v1112_v40 = vrot.slane %v1111_v37, 4  ;;  %v1010_v41 = vadd.f32 %v1009_v38, %v961_v33  ;;  %v962_v43 = vpop.f32.mrf.mxu1 }
  0xcd   : > { %v963_v44 = vadd.f32 %v962_v43, %v913_v42  ;;  %v1788_v43 = vld [vmem:[%s2319_s4 + $0x28] sm:$0xff] }
  0xce   : > { %v1059_v45 = vadd.f32 %v1058_v39, %v1010_v41  ;;  %v1113_v46 = vmax.f32 %v1111_v37, %v1112_v40  ;;  %1304 = vmatpush.bf16.msrb.mxu0 %v1788_v43  ;;  %v1785_v43 = vld [vmem:[%s2319_s4 + $0x10] sm:$0xff] }
  0xd0   : > { %v1114_v50 = vrot.slane %v1113_v46, 2  ;;  %v1097_v57 = vadd.f32 %v2214_v31, %v1059_v45 }
  0xd2   : > { %v1115_v56 = vmax.f32 %v1113_v46, %v1114_v50 }
  0xd3   : > { %v1011_v48 = vpop.f32.mrf.mxu2  ;;  %v916_v52 = vpop.f32.mrf.mxu0 }
  0xd4   : > { %v1060_v49 = vpop.f32.mrf.mxu3  ;;  %v1012_v51 = vadd.f32 %v1011_v48, %v963_v44  ;;  %v965_v53 = vpop.f32.mrf.mxu1  ;;  %v1116_v62 = vrot.slane %v1115_v56, 1 }
  0xd5   : > { %v966_v54 = vadd.f32 %v965_v53, %v916_v52 }
  0xd6   : > { %v1061_v55 = vadd.f32 %v1060_v49, %v1012_v51  ;;  %v1117_v6 = vmax.f32 %v1115_v56, %v1116_v62 }
  0xd8   : > { %v1098_v58 = vadd.f32 %v2219_v32, %v1061_v55  ;;  %v1171_v13 = vadd.f32 %v2231_v7, %v1117_v6  ;;  %v1787_v6 = vld [vmem:[%s2319_s4 + $0x20] sm:$0xff] }
  0xd9   : > { %1305 = vmatpush.bf16.msrb.mxu0 %v1787_v6 }
  0xda   : > { %v1118_v59 = vmax.f32 %v1097_v57, %v1098_v58  ;;  %v1179_v21 = vmax.f32 %v1171_v13, 0.0 }
  0xdb   : > { %v1014_v60 = vpop.f32.mrf.mxu2  ;;  %v918_v1 = vpop.f32.mrf.mxu0 }
  0xdc   : > { %v1063_v61 = vpop.f32.mrf.mxu3  ;;  %v1119_v63 = vrot.slane %v1118_v59, 4  ;;  %v1015_v0 = vadd.f32 %v1014_v60, %v966_v54  ;;  %v967_v2 = vpop.f32.mrf.mxu1  ;;  %v1187_v29 = vpack.c.bf16 %v1179_v21, %v1179_v21 }
  0xdd   : > { %v968_v3 = vadd.f32 %v967_v2, %v918_v1 }
  0xde   : > { %v1120_v4 = vmax.f32 %v1118_v59, %v1119_v63  ;;  %v1064_v5 = vadd.f32 %v1063_v61, %v1015_v0  ;;  %v1223_v40 = vunpack.c.l.b16 %v1187_v29 }
  0xe0   : > { %v1121_v8 = vrot.slane %v1120_v4, 2  ;;  %v1099_v23 = vadd.f32 %v2214_v31, %v1064_v5 }
  0xe2   : > { %v1122_v10 = vmax.f32 %v1120_v4, %v1121_v8 }
  0xe3   : > { %v1016_v11 = vpop.f32.mrf.mxu2  ;;  %v921_v16 = vpop.f32.mrf.mxu0 }
  0xe4   : > { %v1065_v12 = vpop.f32.mrf.mxu3  ;;  %v1123_v14 = vrot.slane %v1122_v10, 1  ;;  %v1017_v15 = vadd.f32 %v1016_v11, %v968_v3  ;;  %v970_v17 = vpop.f32.mrf.mxu1 }
  0xe5   : > { %v971_v18 = vadd.f32 %v970_v17, %v921_v16 }
  0xe6   : > { %v1124_v19 = vmax.f32 %v1122_v10, %v1123_v14  ;;  %v1066_v20 = vadd.f32 %v1065_v12, %v1017_v15 }
  0xe8   : > { %v1172_v22 = vadd.f32 %v2231_v7, %v1124_v19  ;;  %v1100_v24 = vadd.f32 %v2219_v32, %v1066_v20 }
  0xea   : > { %v1180_v25 = vmax.f32 %v1172_v22, 0.0  ;;  %v1125_v26 = vmax.f32 %v1099_v23, %v1100_v24  ;;  %v1786_v23 = vld [vmem:[%s2319_s4 + $0x18] sm:$0xff] }
  0xeb   : > { %v1019_v27 = vpop.f32.mrf.mxu2  ;;  %v923_v35 = vpop.f32.mrf.mxu0  ;;  %1306 = vmatpush.bf16.msrb.mxu0 %v1786_v23 }
  0xec   : > { %v1068_v28 = vpop.f32.mrf.mxu3  ;;  %v1188_v30 = vpack.c.bf16 %v1180_v25, %v1180_v25  ;;  %v1126_v33 = vrot.slane %v1125_v26, 4  ;;  %v1020_v34 = vadd.f32 %v1019_v27, %v971_v18  ;;  %v972_v36 = vpop.f32.mrf.mxu1 }
  0xed   : > { %v973_v45 = vadd.f32 %v972_v36, %v923_v35 }
  0xee   : > { %v1224_v37 = vunpack.c.l.b16 %v1188_v30  ;;  %v1127_v38 = vmax.f32 %v1125_v26, %v1126_v33  ;;  %v1069_v39 = vadd.f32 %v1068_v28, %v1020_v34 }
  0xef   : > { %1307 = vmatpush.bf16.msrb.mxu0 %v1785_v43 }
  0xf0   : > { %v1231_v41 = vrot.slane %v1224_v37, 7  ;;  %v1128_v42 = vrot.slane %v1127_v38, 2  ;;  %v1101_v56 = vadd.f32 %v2214_v31, %v1069_v39 }
  0xf2   : > { %v1129_v44 = vmax.f32 %v1127_v38, %v1128_v42  ;;  %v1233_v46 = vsel %vm1232_vm3, %v1231_v41, %v1223_v40 }
  0xf3   : > { %v1021_v47 = vpop.f32.mrf.mxu2  ;;  %v926_v51 = vpop.f32.mrf.mxu0 }
  0xf4   : > { %v1070_v48 = vpop.f32.mrf.mxu3  ;;  %v1130_v49 = vrot.slane %v1129_v44, 1  ;;  %v1022_v50 = vadd.f32 %v1021_v47, %v973_v45  ;;  %v975_v52 = vpop.f32.mrf.mxu1 }
  0xf5   : > { %v976_v26 = vadd.f32 %v975_v52, %v926_v51 }
  0xf6   : > { %v1131_v53 = vmax.f32 %v1129_v44, %v1130_v49  ;;  %v1071_v54 = vadd.f32 %v1070_v48, %v1022_v50 }
  0xf8   : > { %v1173_v55 = vadd.f32 %v2231_v7, %v1131_v53  ;;  %v1102_v57 = vadd.f32 %v2219_v32, %v1071_v54 }
  0xfa   : > { %v1181_v58 = vmax.f32 %v1173_v55, 0.0  ;;  %v1132_v59 = vmax.f32 %v1101_v56, %v1102_v57 }
  0xfb   : > { %v1024_v60 = vpop.f32.mrf.mxu2  ;;  %v928_v0 = vpop.f32.mrf.mxu0 }
  0xfc   : > { %v1073_v61 = vpop.f32.mrf.mxu3  ;;  %v1189_v62 = vpack.c.bf16 %v1181_v58, %v1181_v58  ;;  %v1133_v63 = vrot.slane %v1132_v59, 4  ;;  %v977_v1 = vpop.f32.mrf.mxu1  ;;  %v1025_v39 = vadd.f32 %v1024_v60, %v976_v26 }
  0xfd   : > { %v978_v27 = vadd.f32 %v977_v1, %v928_v0 }
  0xfe   : > { %v1225_v2 = vunpack.c.l.b16 %v1189_v62  ;;  %v1134_v3 = vmax.f32 %v1132_v59, %v1133_v63  ;;  %v1074_v44 = vadd.f32 %v1073_v61, %v1025_v39 }
 0x100   : > { %v1234_v4 = vrot.slane %v1225_v2, 6  ;;  %v1135_v5 = vrot.slane %v1134_v3, 2  ;;  %v1103_v53 = vadd.f32 %v2214_v31, %v1074_v44 }
 0x102   : > { %v1136_v8 = vmax.f32 %v1134_v3, %v1135_v5  ;;  %v1236_v9 = vsel %vm1235_vm4, %v1234_v4, %v1233_v46  ;;  %v1784_v4 = vld [vmem:[%s2319_s4 + $0x8] sm:$0xff] }
 0x103   : > { %v1026_v10 = vpop.f32.mrf.mxu2  ;;  %v931_v13 = vpop.f32.mrf.mxu0  ;;  %1308 = vmatpush.bf16.msrb.mxu0 %v1784_v4 }
 0x104   : > { %v1075_v11 = vpop.f32.mrf.mxu3  ;;  %v1137_v12 = vrot.slane %v1136_v8, 1  ;;  %v980_v14 = vpop.f32.mrf.mxu1  ;;  %v1027_v33 = vadd.f32 %v1026_v10, %v978_v27  ;;  %v1783_v10 = vld [vmem:[%s2319_s4] sm:$0xff] }
 0x105   : > { %v981_v28 = vadd.f32 %v980_v14, %v931_v13 }
 0x106   : > { %v1138_v15 = vmax.f32 %v1136_v8, %v1137_v12  ;;  %v1076_v41 = vadd.f32 %v1075_v11, %v1027_v33 }
 0x107   : > { %1309 = vmatpush.bf16.msrb.mxu0 %v1783_v10 }
 0x108   : > { %v1174_v16 = vadd.f32 %v2231_v7, %v1138_v15  ;;  %v1104_v46 = vadd.f32 %v2219_v32, %v1076_v41 }
 0x10a   : > { %v1182_v17 = vmax.f32 %v1174_v16, 0.0  ;;  %v1139_v55 = vmax.f32 %v1103_v53, %v1104_v46  ;;  %v1795_v53 = vld [vmem:[#allocation2 + $0x20] sm:$0xff] }
 0x10b   : > { %v1029_v18 = vpop.f32.mrf.mxu2  ;;  %v933_v21 = vpop.f32.mrf.mxu0 }
 0x10c   : > { %v1078_v19 = vpop.f32.mrf.mxu3  ;;  %v1190_v20 = vpack.c.bf16 %v1182_v17, %v1182_v17  ;;  %v982_v22 = vpop.f32.mrf.mxu1  ;;  %v1030_v40 = vadd.f32 %v1029_v18, %v981_v28  ;;  %v1140_v59 = vrot.slane %v1139_v55, 4 }
 0x10d   : > { %v983_v29 = vadd.f32 %v982_v22, %v933_v21 }
 0x10e   : > { %v1226_v24 = vunpack.c.l.b16 %v1190_v20  ;;  %v1079_v45 = vadd.f32 %v1078_v19, %v1030_v40  ;;  %v1141_v5 = vmax.f32 %v1139_v55, %v1140_v59  ;;  %v1797_v40 = vld [vmem:[#allocation2 + $0x30] sm:$0xff] }
 0x110   : > { %v1237_v25 = vrot.slane %v1226_v24, 5  ;;  %v1105_v54 = vadd.f32 %v2214_v31, %v1079_v45  ;;  %v1142_v12 = vrot.slane %v1141_v5, 2 }
 0x112   : > { %v2253_v30 = vsel %vm1238_vm5, %v1237_v25, %v1236_v9  ;;  %v1143_v19 = vmax.f32 %v1141_v5, %v1142_v12  ;;  %v1792_v5 = vld [vmem:[#allocation2 + $0x8] sm:$0xff]  ;;  %v1791_v12 = vld [vmem:[#allocation2] sm:$0xff] }
 0x113   : > { %v1031_v34 = vpop.f32.mrf.mxu2  ;;  %v936_v37 = vpop.f32.mrf.mxu0 }
 0x114   : > { %v1080_v35 = vpop.f32.mrf.mxu3  ;;  %v1032_v36 = vadd.f32 %v1031_v34, %v983_v29  ;;  %v985_v38 = vpop.f32.mrf.mxu1  ;;  %v1144_v27 = vrot.slane %v1143_v19, 1 }
 0x115   : > { %v986_v50 = vadd.f32 %v985_v38, %v936_v37  ;;  %v1798_v37 = vld [vmem:[#allocation2 + $0x38] sm:$0xff] }
 0x116   : > { %v1081_v42 = vadd.f32 %v1080_v35, %v1032_v36  ;;  %v1145_v39 = vmax.f32 %v1143_v19, %v1144_v27  ;;  %1385 = vmatpush.bf16.msrb.mxu1 %v1798_v37 }
 0x118   : > { %v1106_v49 = vadd.f32 %v2219_v32, %v1081_v42  ;;  %v1175_v46 = vadd.f32 %v2231_v7, %v1145_v39 }
 0x11a   : > { %v1146_v56 = vmax.f32 %v1105_v54, %v1106_v49  ;;  %1386 = vmatpush.bf16.msrb.mxu1 %v1797_v40 }
 0x11b   : > { %v1034_v47 = vpop.f32.mrf.mxu2  ;;  %v938_v51 = vpop.f32.mrf.mxu0 }
 0x11c   : > { %v1083_v48 = vpop.f32.mrf.mxu3  ;;  %v987_v52 = vpop.f32.mrf.mxu1  ;;  %v1035_v57 = vadd.f32 %v1034_v47, %v986_v50  ;;  %v1147_v62 = vrot.slane %v1146_v56, 4  ;;  %v1796_v47 = vld [vmem:[#allocation2 + $0x28] sm:$0xff] }
 0x11d   : > { %v988_v58 = vadd.f32 %v987_v52, %v938_v51  ;;  %v1183_v52 = vmax.f32 %v1175_v46, 0.0 }
 0x11e   : > { %v1084_v63 = vadd.f32 %v1083_v48, %v1035_v57  ;;  %v1148_v6 = vmax.f32 %v1146_v56, %v1147_v62  ;;  %1387 = vmatpush.bf16.msrb.mxu1 %v1796_v47  ;;  %v1794_v57 = vld [vmem:[#allocation2 + $0x18] sm:$0xff] }
 0x120   : > { %v1107_v8 = vadd.f32 %v2214_v31, %v1084_v63  ;;  %v1149_v15 = vrot.slane %v1148_v6, 2  ;;  %v1793_v63 = vld [vmem:[#allocation2 + $0x10] sm:$0xff] }
 0x122   : > { %v1150_v22 = vmax.f32 %v1148_v6, %v1149_v15  ;;  %1388 = vmatpush.bf16.msrb.mxu1 %v1795_v53 }
 0x123   : > { %v1036_v60 = vpop.f32.mrf.mxu2  ;;  %v941_v1 = vpop.f32.mrf.mxu0 }
 0x124   : > { %v1085_v61 = vpop.f32.mrf.mxu3  ;;  %v1037_v0 = vadd.f32 %v1036_v60, %v988_v58  ;;  %v990_v2 = vpop.f32.mrf.mxu1  ;;  %v1151_v29 = vrot.slane %v1150_v22, 1 }
 0x125   : > { %v991_v17 = vadd.f32 %v990_v2, %v941_v1 }
 0x126   : > { %v1086_v3 = vadd.f32 %v1085_v61, %v1037_v0  ;;  %v1152_v41 = vmax.f32 %v1150_v22, %v1151_v29  ;;  %1389 = vmatpush.bf16.msrb.mxu1 %v1794_v57  ;;  %v1854_v22 = vld [vmem:[%s2322_s7] ss:$0 sm:$0xff] }
 0x128   : > { %v1108_v9 = vadd.f32 %v2219_v32, %v1086_v3  ;;  %v1176_v48 = vadd.f32 %v2231_v7, %v1152_v41 }
 0x12a   : > { %v1153_v11 = vmax.f32 %v1107_v8, %v1108_v9  ;;  %v1184_v54 = vmax.f32 %v1176_v48, 0.0  ;;  %1390 = vmatpush.bf16.msrb.mxu1 %v1793_v63 }
 0x12b   : > { %v1039_v13 = vpop.f32.mrf.mxu2  ;;  %v943_v20 = vpop.f32.mrf.mxu0 }
 0x12c   : > { %v1088_v14 = vpop.f32.mrf.mxu3  ;;  %v1154_v16 = vrot.slane %v1153_v11, 4  ;;  %v992_v21 = vpop.f32.mrf.mxu1  ;;  %v1040_v24 = vadd.f32 %v1039_v13, %v991_v17  ;;  %v1192_v58 = vpack.c.bf16 %v1184_v54, %v1184_v54  ;;  %v1853_v17 = vld [vmem:[%s2320_s5] ss:$0 sm:$0xff] }
 0x12d   : > { %v993_v26 = vadd.f32 %v992_v21, %v943_v20 }
 0x12e   : > { %v1155_v18 = vmax.f32 %v1153_v11, %v1154_v16  ;;  %v1089_v33 = vadd.f32 %v1088_v14, %v1040_v24  ;;  %v1228_v1 = vunpack.c.l.b16 %v1192_v58  ;;  %1391 = vmatpush.bf16.msrb.mxu1 %v1792_v5 }
 0x130   : > { %v1156_v23 = vrot.slane %v1155_v18, 2  ;;  %v1109_v42 = vadd.f32 %v2214_v31, %v1089_v33  ;;  %v1243_v8 = vrot.slane %v1228_v1, 3 }
 0x132   : > { %v1157_v25 = vmax.f32 %v1155_v18, %v1156_v23  ;;  %1392 = vmatpush.bf16.msrb.mxu1 %v1791_v12 }
 0x133   : > { %v1041_v28 = vpop.f32.mrf.mxu2 }
 0x134   : > { %v1042_v34 = vadd.f32 %v1041_v28, %v993_v26  ;;  %v1158_v35 = vrot.slane %v1157_v25, 1  ;;  %v1090_v36 = vpop.f32.mrf.mxu3 }
 0x136   : > { %v1091_v38 = vadd.f32 %v1090_v36, %v1042_v34  ;;  %v1159_v44 = vmax.f32 %v1157_v25, %v1158_v35 }
 0x138   : > { %v1110_v43 = vadd.f32 %v2219_v32, %v1091_v38  ;;  %v1177_v50 = vadd.f32 %v2231_v7, %v1159_v44  ;;  %v1191_v32 = vpack.c.bf16 %v1183_v52, %v1183_v52 }
 0x13a   : > { %v1160_v45 = vmax.f32 %v1109_v42, %v1110_v43  ;;  %v1185_v31 = vmax.f32 %v1177_v50, 0.0  ;;  %v1227_v62 = vunpack.c.l.b16 %v1191_v32 }
 0x13c   : > { %v1161_v49 = vrot.slane %v1160_v45, 4  ;;  %v1193_v60 = vpack.c.bf16 %v1185_v31, %v1185_v31  ;;  %v1240_v4 = vrot.slane %v1227_v62, 4 }
 0x13e   : > { %v1162_v51 = vmax.f32 %v1160_v45, %v1161_v49  ;;  %v1229_v2 = vunpack.c.l.b16 %v1193_v60  ;;  %v1242_v11 = vsel %vm1241_vm6, %v1240_v4, %v2253_v30 }
 0x13f   : > { %v1245_v13 = vsel %vm1244_vm7, %v1243_v8, %v1242_v11 }
 0x140   : > { %v1163_v55 = vrot.slane %v1162_v51, 2  ;;  %v1246_v9 = vrot.slane %v1229_v2, 2 }
 0x142   : > { %v1164_v56 = vmax.f32 %v1162_v51, %v1163_v55  ;;  %v1248_v14 = vsel %vm1247_vm8, %v1246_v9, %v1245_v13 }
 0x144   : > { %v1165_v59 = vrot.slane %v1164_v56, 1 }
 0x146   : > { %v1166_v61 = vmax.f32 %v1164_v56, %v1165_v59 }
 0x148   : > { %v1178_v0 = vadd.f32 %v2231_v7, %v1166_v61 }
 0x14a   : > { %v1186_v3 = vmax.f32 %v1178_v0, 0.0 }
 0x14c   : > { %v1194_v6 = vpack.c.bf16 %v1186_v3, %v1186_v3 }
 0x14e   : > { %v1230_v10 = vunpack.c.l.b16 %v1194_v6 }
 0x150   : > { %v1249_v7 = vrot.slane %v1230_v10, 1 }
 0x152   : > { %v1251_v15 = vsel %vm1250_vm9, %v1249_v7, %v1248_v14 }
 0x153   : > { %v1252_v16 = vpack.c.b16 %v1251_v15, %v1251_v15 }
 0x155   : > { %1310 = vmatmul.bf16.vlgmr.msrb.gmra.mxu0 %v1252_v16 }
 0x1d2   : > { %v1311_v18 = vpop.f32.mrf.mxu0 }
 0x1d3   : > { %v1312_v19 = vadd.f32 %v1853_v17, %v1311_v18 }
 0x1d5   : > { %1855 = vtanh.f32 %v1312_v19 }
 0x1da   : > { %v1313_v20 = vpop.f32.mrf.mxu0 }
 0x1db   : > { %v1856_v30 = vpop.eup %1855 }
 0x1dc   : > { %v1316_v21 = vpack.c.bf16 %v1856_v30, %v1856_v30 }
 0x1de   : > { %1393 = vmatmul.bf16.vlgmr.msrb.gmra.mxu1 %v1316_v21 }
 0x25b   : > { %v1394_v23 = vpop.f32.mrf.mxu1 }
 0x25c   : > { %v1395_v24 = vadd.f32 %v1854_v22, %v1394_v23 }
 0x25e   : > { %v1738_v25 = vmul.f32 -1.442695, %v1395_v24 }
 0x260   : > { %1857 = vpow2.f32 %v1738_v25 }
 0x263   : > { %v1396_v26 = vpop.f32.mrf.mxu1 }
 0x266   : > { %v1858_v27 = vpop.eup %1857 }
 0x267   : > { %v1401_v28 = vadd.f32 1.0, %v1858_v27 }
 0x269   : > { %1859 = vrcp.f32 %v1401_v28  ;;  %v1413_v35 = vand.u32 2147483648, %v1401_v28  ;;  %v1411_v37 = vand.u32 2147483647, %v1401_v28  ;;  %vm1407_vm11 = vweird.f32 %v1401_v28 }
 0x26b   : > { %v1414_v39 = vor.u32 1.1754944e-38, %v1413_v35  ;;  %vm1412_vm13 = vcmp.eq.f32.partialorder %v1411_v37, 8.507059e+37 }
 0x26f   : > { %v1860_v29 = vpop.eup %1859 }
 0x270   : > { %v1403_v33 = vmul.f32 %v1860_v29, %v1401_v28  ;;  %vm1408_vm10 = vweird.f32 %v1860_v29 }
 0x271   : > { %vm1409_vm12 = vmor %vm1407_vm11, %vm1408_vm10 }
 0x272   : > { %v1404_v34 = vsub.f32 1.0, %v1403_v33 }
 0x274   : > { %v1405_v36 = vmul.f32 %v1860_v29, %v1404_v34 }
 0x276   : > { %v1406_v38 = vadd.f32 %v1860_v29, %v1405_v36 }
 0x278   : > { %v1410_v40 = vsel %vm1409_vm12, %v1860_v29, %v1406_v38 }
 0x279   : > { %v1415_v41 = vsel %vm1412_vm13, %v1414_v39, %v1410_v40 }
 0x27a   : > { %1417 = vst [vmem:[%s318_s23] sm:$0xff] %v1415_v41 }
 0x27b   : > { %1918 = shalt.err (!%p1915_p8)
}
 0x27c   : > { %1804 = dma.vmem_to_hbm [thread:$0]  (%p2045_p5), %s1432_s25, 128, %s1434_s18, %s1419_s26  }
 0x27d PF: > { %p1816_p9 = scmp.ge.s32.totalorder %s1957_s30, 2  ;;  %s1445_s10 = sand.u32 1, %s1945_s27  }
 0x27e   : > { %s1446_s13 = scalar_lea.sflag [#allocation4], %s1445_s10 }
 0x27f   : > { %p1811_p10 = pnand %p1816_p9, %p2049_p6 }
 0x281   : > { %p1812_p11 = pneg %p1811_p10 }
 0x283   : > { %1940 = dma.done.wait (%p1812_p11), %s1446_s13, 128  }
 0x284   : > { %1942 = vsyncadd (%p1812_p11), %s1446_s13, 4294967168  ;;  %p19_p12 = scmp.ge.s32.totalorder %s2032_s11, 4   ;;  %s2326_s27 = smov %s1949_s28 }
 0x285   : > { %s2327_s28 = smov %s1953_s29  ;;  %s2328_s29 = smov %s2043_s14 }
 0x286   : > { %s2329_s30 = smov %s2032_s11  ;;  %21 = sbr.rel (!%p19_p12) target bundleno = 4 (0x4), region = 92 }
 0x28b   :  { %1452 = vsyncpa [#allocation3], 1 }
 0x28c   :  { %1454 = vsyncpa [#allocation3 + $0x1], 1 }
 0x28d   :  { %1455 = vsyncpa [#allocation4], 1 }
 0x28e   :  { %1457 = vsyncpa [#allocation4 + $0x1], 1 }

</bundles_post_ra>
